<compile_context>
chip_gen: v6e
topology: v6e:2x2x1
jax: 0.10.0
libtpu: 0.0.40
codegen_flags: <defaults>
</compile_context>

<pallas_src>
import math
from functools import partial

import numpy as np
import jax
import jax.numpy as jnp
from jax.experimental import pallas as pl
from jax.experimental.pallas import tpu as pltpu

EPS = 1e-5


def same_padding(kernel_size):
    return math.floor((kernel_size - 1) / 2)


def _compiler_params():
    # Parallel batch axis (megacore on v7x) + explicit, v7x-safe VMEM budget.
    return pltpu.CompilerParams(
        dimension_semantics=("parallel",),
        vmem_limit_bytes=32 * 1024 * 1024,
    )


# ------------------------------ in-kernel helpers -------------------------------
def _shift_rows(t, s):
    """shifted[h] = t[h + s], zero-filled outside [0, H).  s is a static Python int."""
    if s == 0:
        return t
    H, WC = t.shape
    z = jnp.zeros((abs(s), WC), t.dtype)
    if s > 0:
        return jnp.concatenate([t[s:, :], z], axis=0)
    return jnp.concatenate([z, t[:H + s, :]], axis=0)


def _conv_rows(x, w_ref, k, pad):
    """'same'-padded kxk conv on lane-packed rows.

    x:     (H, W*Cin) bf16 tile (one image), VMEM resident.
    w_ref: (k, W*Cin, W*Cout) banded weights (bf16).
    Returns (H, W*Cout) float32:  out[h] = sum_dy x[h + dy - pad] @ B[dy]
    implemented as k matmuls whose f32 partial products are row-shifted and summed.
    """
    acc = None
    for dy in range(k):
        t = jnp.dot(x, w_ref[dy], preferred_element_type=jnp.float32)
        t = _shift_rows(t, dy - pad)
        acc = t if acc is None else acc + t
    return acc


# ----------------------------------- kernels ------------------------------------
def _stage1_stats_kernel(x_ref, w1_ref, b1_ref, st_ref, *, k, pad):
    """Pass 1: per-image partial BN1 statistics of relu(conv1(x) + b1)."""
    x = x_ref[0]                                               # (H, W*Cin) bf16
    h1 = jnp.maximum(_conv_rows(x, w1_ref, k, pad) + b1_ref[...], 0.0)
    st_ref[0] = jnp.concatenate(
        [jnp.sum(h1, axis=0, keepdims=True),
         jnp.sum(h1 * h1, axis=0, keepdims=True)], axis=0)     # (2, W*Cout)


def _stage2_skip_kernel(x_ref, w1_ref, w2_ref, wsk_ref, prm_ref, y2_ref, st_ref,
                        *, k, pad):
    """Pass 2 (Cin != Cout): conv1+ReLU+BN1 -> conv2+ReLU -> + skip(x).
    Emits pre-BN2 activations (bf16) and per-image partial BN2 statistics.
    prm_ref rows: [b1, scale1, shift1, b2, b_skip]."""
    x = x_ref[0]                                               # (H, W*Cin) bf16
    h1 = jnp.maximum(_conv_rows(x, w1_ref, k, pad) + prm_ref[0:1, :], 0.0)
    h1 = h1 * prm_ref[1:2, :] + prm_ref[2:3, :]                # BN1 affine (f32)
    h2 = jnp.maximum(
        _conv_rows(h1.astype(jnp.bfloat16), w2_ref, k, pad) + prm_ref[3:4, :], 0.0)
    # fused 1x1 skip conv on the already-resident x tile (no HBM residual round trip)
    res = jnp.dot(x, wsk_ref[...], preferred_element_type=jnp.float32) + prm_ref[4:5, :]
    y2 = h2 + res
    y2_ref[0] = y2.astype(y2_ref.dtype)
    st_ref[0] = jnp.concatenate(
        [jnp.sum(y2, axis=0, keepdims=True),
         jnp.sum(y2 * y2, axis=0, keepdims=True)], axis=0)


def _stage2_identity_kernel(x_ref, res_ref, w1_ref, w2_ref, prm_ref, y2_ref, st_ref,
                            *, k, pad):
    """Pass 2 (Cin == Cout): identity residual.  prm_ref rows: [b1, scale1, shift1, b2]."""
    x = x_ref[0]
    h1 = jnp.maximum(_conv_rows(x, w1_ref, k, pad) + prm_ref[0:1, :], 0.0)
    h1 = h1 * prm_ref[1:2, :] + prm_ref[2:3, :]
    h2 = jnp.maximum(
        _conv_rows(h1.astype(jnp.bfloat16), w2_ref, k, pad) + prm_ref[3:4, :], 0.0)
    y2 = h2 + res_ref[0]
    y2_ref[0] = y2.astype(y2_ref.dtype)
    st_ref[0] = jnp.concatenate(
        [jnp.sum(y2, axis=0, keepdims=True),
         jnp.sum(y2 * y2, axis=0, keepdims=True)], axis=0)


def _bn2_apply_kernel(y_ref, prm_ref, o_ref):
    """Pass 3: lane-dense tiled BN2 affine.  prm_ref rows: [scale2, shift2]."""
    o_ref[0] = (y_ref[0].astype(jnp.float32) * prm_ref[0:1, :]
                + prm_ref[1:2, :]).astype(o_ref.dtype)


# ------------------------- wrapper helpers (tiny, plain JAX) ---------------------
def _banded_conv_weight(w, W):
    """w: (Cout, Cin, kh, kw) OIHW -> (kh, W*Cin, W*Cout) banded matrices B such that
    out_row[h] = sum_dy in_row[h + dy - pad] @ B[dy] on (w-major, c-minor) packed rows."""
    Cout, Cin, kh, kw = w.shape
    pad = same_padding(kw)
    wi = np.arange(W)[:, None]
    wo = np.arange(W)[None, :]
    sel = np.stack([(wi == (wo + dx - pad)) for dx in range(kw)], 0).astype(np.float32)
    B = jnp.einsum("xiw,ocyx->yicwo", jnp.asarray(sel), w)     # (kh, W, Cin, W, Cout)
    return B.reshape(kh, W * Cin, W * Cout)


def _banded_1x1_weight(w, W):
    """w: (Cout, Cin, 1, 1) -> block-diagonal (W*Cin, W*Cout)."""
    B = jnp.einsum("iw,oc->icwo", jnp.eye(W, dtype=w.dtype), w[:, :, 0, 0])
    return B.reshape(W * w.shape[1], W * w.shape[0])


def _tile_row(v, W):
    """(C,) per-channel vector -> (1, W*C) row matching the w-major/c-minor packing."""
    return jnp.tile(v, W).reshape(1, -1)


def _fold_stats(stats, W, Cout, npix):
    """(N, 2, W*Cout) per-tile (sum, sumsq) -> per-channel (mean, biased var)."""
    s = stats.sum(axis=0).reshape(2, W, Cout).sum(axis=1)      # (2, Cout)
    mean = s[0] / npix
    var = s[1] / npix - mean * mean
    return mean, var


# ----------------------------------- forward ------------------------------------
@partial(jax.jit, static_argnames=("kernel_size",))
def residual_layer_forward(x_nchw, params, kernel_size=3):
    N, Cin, H, W = x_nchw.shape
    Cout = params["w1"].shape[0]
    k = kernel_size
    pad = same_padding(k)
    WCi, WCo = W * Cin, W * Cout
    npix = N * H * W
    has_skip = Cin != Cout
    cp = _compiler_params()

    # layout: NCHW -> lane-packed rows (N, H, W*C); bf16 operands for the MXU.
    x_pack = jnp.transpose(x_nchw, (0, 2, 3, 1)).astype(jnp.float32).reshape(N, H, WCi)
    x_bf = x_pack.astype(jnp.bfloat16)

    w1b = _banded_conv_weight(params["w1"], W).astype(jnp.bfloat16)   # (k, WCi, WCo)
    w2b = _banded_conv_weight(params["w2"], W).astype(jnp.bfloat16)   # (k, WCo, WCo)
    b1r = _tile_row(params["b1"], W)
    b2r = _tile_row(params["b2"], W)

    # ---- pass 1: partial BN1 stats of relu(conv1(x) + b1) -------------------------
    stats1 = pl.pallas_call(
        partial(_stage1_stats_kernel, k=k, pad=pad),
        grid=(N,),
        in_specs=[
            pl.BlockSpec((1, H, WCi), lambda i: (i, 0, 0)),
            pl.BlockSpec((k, WCi, WCo), lambda i: (0, 0, 0)),
            pl.BlockSpec((1, WCo), lambda i: (0, 0)),
        ],
        out_specs=pl.BlockSpec((1, 2, WCo), lambda i: (i, 0, 0)),
        out_shape=jax.ShapeDtypeStruct((N, 2, WCo), jnp.float32),
        compiler_params=cp,
    )(x_bf, w1b, b1r)

    mean1, var1 = _fold_stats(stats1, W, Cout, npix)
    scale1 = params["g1"] * jax.lax.rsqrt(var1 + EPS)
    shift1 = params["beta1"] - mean1 * scale1

    # ---- pass 2: conv1+ReLU+BN1 -> conv2+ReLU -> (+skip); y2 + partial BN2 stats ---
    prm_rows = [b1r, _tile_row(scale1, W), _tile_row(shift1, W), b2r]
    y2_shapes = (jax.ShapeDtypeStruct((N, H, WCo), jnp.bfloat16),
                 jax.ShapeDtypeStruct((N, 2, WCo), jnp.float32))
    y2_specs = [pl.BlockSpec((1, H, WCo), lambda i: (i, 0, 0)),
                pl.BlockSpec((1, 2, WCo), lambda i: (i, 0, 0))]

    if has_skip:
        wskb = _banded_1x1_weight(params["w_skip"], W).astype(jnp.bfloat16)
        prm_rows.append(_tile_row(params["b_skip"], W))
        prm2 = jnp.concatenate(prm_rows, axis=0)               # (5, WCo)
        y2, stats2 = pl.pallas_call(
            partial(_stage2_skip_kernel, k=k, pad=pad),
            grid=(N,),
            in_specs=[
                pl.BlockSpec((1, H, WCi), lambda i: (i, 0, 0)),
                pl.BlockSpec((k, WCi, WCo), lambda i: (0, 0, 0)),
                pl.BlockSpec((k, WCo, WCo), lambda i: (0, 0, 0)),
                pl.BlockSpec((WCi, WCo), lambda i: (0, 0)),
                pl.BlockSpec((5, WCo), lambda i: (0, 0)),
            ],
            out_specs=y2_specs,
            out_shape=y2_shapes,
            compiler_params=cp,
        )(x_bf, w1b, w2b, wskb, prm2)
    else:
        prm2 = jnp.concatenate(prm_rows, axis=0)               # (4, WCo)
        y2, stats2 = pl.pallas_call(
            partial(_stage2_identity_kernel, k=k, pad=pad),
            grid=(N,),
            in_specs=[
                pl.BlockSpec((1, H, WCi), lambda i: (i, 0, 0)),
                pl.BlockSpec((1, H, WCo), lambda i: (i, 0, 0)),   # f32 residual = x
                pl.BlockSpec((k, WCi, WCo), lambda i: (0, 0, 0)),
                pl.BlockSpec((k, WCo, WCo), lambda i: (0, 0, 0)),
                pl.BlockSpec((4, WCo), lambda i: (0, 0)),
            ],
            out_specs=y2_specs,
            out_shape=y2_shapes,
            compiler_params=cp,
        )(x_bf, x_pack, w1b, w2b, prm2)

    mean2, var2 = _fold_stats(stats2, W, Cout, npix)
    scale2 = params["g2"] * jax.lax.rsqrt(var2 + EPS)
    shift2 = params["beta2"] - mean2 * scale2
    prm3 = jnp.concatenate([_tile_row(scale2, W), _tile_row(shift2, W)], axis=0)

    # ---- pass 3: tiled lane-dense BN2 affine ---------------------------------------
    out_pack = pl.pallas_call(
        _bn2_apply_kernel,
        grid=(N,),
        in_specs=[
            pl.BlockSpec((1, H, WCo), lambda i: (i, 0, 0)),
            pl.BlockSpec((2, WCo), lambda i: (0, 0)),
        ],
        out_specs=pl.BlockSpec((1, H, WCo), lambda i: (i, 0, 0)),
        out_shape=jax.ShapeDtypeStruct((N, H, WCo), jnp.float32),
        compiler_params=cp,
    )(y2, prm3)

    return jnp.transpose(out_pack.reshape(N, H, W, Cout), (0, 3, 1, 2))   # NCHW


# ------------------------------ pure-JAX reference -------------------------------
def _ref_forward(x, params, kernel_size=3):
    Cin = x.shape[1]
    Cout = params["w1"].shape[0]
    pad = same_padding(kernel_size)

    def conv(x, w, b, p):
        y = jax.lax.conv_general_dilated(
            x, w, (1, 1), ((p, p), (p, p)),
            dimension_numbers=("NCHW", "OIHW", "NCHW"))
        return y + b.reshape(1, -1, 1, 1)

    def bn(x, g, b):
        mean = x.mean(axis=(0, 2, 3), keepdims=True)
        var = ((x - mean) ** 2).mean(axis=(0, 2, 3), keepdims=True)
        return (x - mean) / jnp.sqrt(var + EPS) * g.reshape(1, -1, 1, 1) + b.reshape(1, -1, 1, 1)

    residual = x
    if Cin != Cout:
        residual = conv(x, params["w_skip"], params["b_skip"], 0)
    out = conv(x, params["w1"], params["b1"], pad)
    out = jnp.maximum(out, 0.0)
    out = bn(out, params["g1"], params["beta1"])
    out = conv(out, params["w2"], params["b2"], pad)
    out = jnp.maximum(out, 0.0)
    out = out + residual
    out = bn(out, params["g2"], params["beta2"])
    return out


# -------------------------------------- main -------------------------------------
if __name__ == "__main__":
    N, Cin, Cout, H, W, K = 2, 4, 8, 16, 16, 3

    key = jax.random.PRNGKey(0)
    ks = jax.random.split(key, 8)
    params = {
        "w1": 0.1 * jax.random.normal(ks[0], (Cout, Cin, K, K), jnp.float32),
        "b1": 0.1 * jax.random.normal(ks[1], (Cout,), jnp.float32),
        "w2": 0.1 * jax.random.normal(ks[2], (Cout, Cout, K, K), jnp.float32),
        "b2": 0.1 * jax.random.normal(ks[3], (Cout,), jnp.float32),
        "w_skip": 0.1 * jax.random.normal(ks[4], (Cout, Cin, 1, 1), jnp.float32),
        "b_skip": 0.1 * jax.random.normal(ks[5], (Cout,), jnp.float32),
        # PyTorch BatchNorm2d default init: weight=1, bias=0
        "g1": jnp.ones((Cout,), jnp.float32),
        "beta1": jnp.zeros((Cout,), jnp.float32),
        "g2": jnp.ones((Cout,), jnp.float32),
        "beta2": jnp.zeros((Cout,), jnp.float32),
    }

    x = jax.random.normal(ks[6], (N, Cin, H, W), jnp.float32)

    out = jax.block_until_ready(residual_layer_forward(x, params, kernel_size=K))
    ref = jax.block_until_ready(_ref_forward(x, params, K))

    assert out.shape == (N, Cout, H, W), out.shape
    # bf16 MXU operands (f32 accumulation) vs. a pure-f32 reference; BatchNorm puts the
    # outputs at unit variance, so the tolerance is absolute in units of ~1.
    assert jnp.allclose(out, ref, atol=5e-2, rtol=5e-2), float(jnp.max(jnp.abs(out - ref)))
    print("KERNEL_OK")
</pallas_src>

<mosaic_0001>
module attributes {stable_mosaic.version = 11 : i64} {
  func.func @_stage1_stats_kernel(%arg0: i32, %arg1: memref<1x16x64xbf16, #tpu.memory_space<vmem>>, %arg2: memref<3x64x128xbf16, #tpu.memory_space<vmem>>, %arg3: memref<1x128xf32, #tpu.memory_space<vmem>>, %arg4: memref<1x2x128xf32, #tpu.memory_space<vmem>>) attributes {dimension_semantics = [#tpu.dimension_semantics<parallel>], iteration_bounds = array<i64: 2>, scalar_prefetch = 0 : i64, scratch_operands = 0 : i64, tpu.core_type = #tpu.core_type<tc>, window_params = [{transform_indices = @transform_0, window_bounds = array<i64: 1, 16, 64>}, {pipeline_mode = #tpu.pipeline_mode<synchronous>, transform_indices = @transform_1, window_bounds = array<i64: 3, 64, 128>}, {pipeline_mode = #tpu.pipeline_mode<synchronous>, transform_indices = @transform_2, window_bounds = array<i64: 1, 128>}, {transform_indices = @transform_3, window_bounds = array<i64: 1, 2, 128>}]} {
    %c0 = arith.constant 0 : index
    %c0_0 = arith.constant 0 : index
    %c0_1 = arith.constant 0 : index
    %0 = vector.load %arg1[%c0, %c0_0, %c0_1] : memref<1x16x64xbf16, #tpu.memory_space<vmem>>, vector<1x16x64xbf16>
    %1 = vector.shape_cast %0 : vector<1x16x64xbf16> to vector<16x64xbf16>
    %c0_2 = arith.constant 0 : index
    %c0_3 = arith.constant 0 : index
    %c0_4 = arith.constant 0 : index
    %2 = vector.load %arg2[%c0_2, %c0_3, %c0_4] : memref<3x64x128xbf16, #tpu.memory_space<vmem>>, vector<1x64x128xbf16>
    %3 = vector.shape_cast %2 : vector<1x64x128xbf16> to vector<64x128xbf16>
    %cst = arith.constant dense<0.000000e+00> : vector<16x128xf32>
    %4 = tpu.matmul %1, %3, %cst {dimension_numbers = #tpu.dot_dimension_numbers<[1], [0], [0], [1], [0, 0, 1, 1], [], []>} : vector<16x64xbf16>, vector<64x128xbf16>, vector<16x128xf32> -> vector<16x128xf32>
    %cst_5 = arith.constant 0.000000e+00 : f32
    %5 = vector.broadcast %cst_5 : f32 to vector<1x128xf32>
    %6 = vector.extract_strided_slice %4 {offsets = [0, 0], sizes = [15, 128], strides = [1, 1]} : vector<16x128xf32> to vector<15x128xf32>
    %7 = tpu.concatenate %5, %6 in 0 : vector<1x128xf32>, vector<15x128xf32> -> vector<16x128xf32>
    %c1 = arith.constant 1 : index
    %c0_6 = arith.constant 0 : index
    %c0_7 = arith.constant 0 : index
    %8 = vector.load %arg2[%c1, %c0_6, %c0_7] : memref<3x64x128xbf16, #tpu.memory_space<vmem>>, vector<1x64x128xbf16>
    %9 = vector.shape_cast %8 : vector<1x64x128xbf16> to vector<64x128xbf16>
    %cst_8 = arith.constant dense<0.000000e+00> : vector<16x128xf32>
    %10 = tpu.matmul %1, %9, %cst_8 {dimension_numbers = #tpu.dot_dimension_numbers<[1], [0], [0], [1], [0, 0, 1, 1], [], []>} : vector<16x64xbf16>, vector<64x128xbf16>, vector<16x128xf32> -> vector<16x128xf32>
    %11 = arith.addf %7, %10 : vector<16x128xf32>
    %c2 = arith.constant 2 : index
    %c0_9 = arith.constant 0 : index
    %c0_10 = arith.constant 0 : index
    %12 = vector.load %arg2[%c2, %c0_9, %c0_10] : memref<3x64x128xbf16, #tpu.memory_space<vmem>>, vector<1x64x128xbf16>
    %13 = vector.shape_cast %12 : vector<1x64x128xbf16> to vector<64x128xbf16>
    %cst_11 = arith.constant dense<0.000000e+00> : vector<16x128xf32>
    %14 = tpu.matmul %1, %13, %cst_11 {dimension_numbers = #tpu.dot_dimension_numbers<[1], [0], [0], [1], [0, 0, 1, 1], [], []>} : vector<16x64xbf16>, vector<64x128xbf16>, vector<16x128xf32> -> vector<16x128xf32>
    %cst_12 = arith.constant 0.000000e+00 : f32
    %15 = vector.broadcast %cst_12 : f32 to vector<1x128xf32>
    %16 = vector.extract_strided_slice %14 {offsets = [1, 0], sizes = [15, 128], strides = [1, 1]} : vector<16x128xf32> to vector<15x128xf32>
    %17 = tpu.concatenate %16, %15 in 0 : vector<15x128xf32>, vector<1x128xf32> -> vector<16x128xf32>
    %18 = arith.addf %11, %17 : vector<16x128xf32>
    %c0_13 = arith.constant 0 : index
    %c0_14 = arith.constant 0 : index
    %19 = vector.load %arg3[%c0_13, %c0_14] : memref<1x128xf32, #tpu.memory_space<vmem>>, vector<1x128xf32>
    %20 = vector.broadcast %19 : vector<1x128xf32> to vector<16x128xf32>
    %21 = arith.addf %18, %20 : vector<16x128xf32>
    %cst_15 = arith.constant 0.000000e+00 : f32
    %22 = vector.broadcast %cst_15 : f32 to vector<16x128xf32>
    %23 = arith.maximumf %21, %22 : vector<16x128xf32>
    %cst_16 = arith.constant dense<0.000000e+00> : vector<128xf32>
    %24 = vector.multi_reduction <add>, %23, %cst_16 [0] : vector<16x128xf32> to vector<128xf32>
    %25 = vector.shape_cast %24 : vector<128xf32> to vector<1x128xf32>
    %26 = arith.mulf %23, %23 : vector<16x128xf32>
    %cst_17 = arith.constant dense<0.000000e+00> : vector<128xf32>
    %27 = vector.multi_reduction <add>, %26, %cst_17 [0] : vector<16x128xf32> to vector<128xf32>
    %28 = vector.shape_cast %27 : vector<128xf32> to vector<1x128xf32>
    %29 = tpu.concatenate %25, %28 in 0 : vector<1x128xf32>, vector<1x128xf32> -> vector<2x128xf32>
    %c0_18 = arith.constant 0 : index
    %c0_19 = arith.constant 0 : index
    %c0_20 = arith.constant 0 : index
    %30 = vector.load %arg4[%c0_18, %c0_19, %c0_20] : memref<1x2x128xf32, #tpu.memory_space<vmem>>, vector<1x2x128xf32>
    %31 = vector.shape_cast %30 : vector<1x2x128xf32> to vector<2x128xf32>
    %32 = vector.shape_cast %29 : vector<2x128xf32> to vector<1x2x128xf32>
    tpu.vector_store %arg4[%c0_18, %c0_19, %c0_20], %32 {strides = array<i32>} : memref<1x2x128xf32, #tpu.memory_space<vmem>>, vector<1x2x128xf32>,
    return
  }
  func.func @transform_0(%arg0: i32) -> (i32, i32, i32) {
    %c0_i32 = arith.constant 0 : i32
    %c0_i32_0 = arith.constant 0 : i32
    %c0_i32_1 = arith.constant 0 : i32
    return %arg0, %c0_i32, %c0_i32_0 : i32, i32, i32
  }
  func.func @transform_1(%arg0: i32) -> (i32, i32, i32) {
    %c0_i32 = arith.constant 0 : i32
    %c0_i32_0 = arith.constant 0 : i32
    %c0_i32_1 = arith.constant 0 : i32
    %c0_i32_2 = arith.constant 0 : i32
    return %c0_i32, %c0_i32_0, %c0_i32_1 : i32, i32, i32
  }
  func.func @transform_2(%arg0: i32) -> (i32, i32) {
    %c0_i32 = arith.constant 0 : i32
    %c0_i32_0 = arith.constant 0 : i32
    %c0_i32_1 = arith.constant 0 : i32
    return %c0_i32, %c0_i32_0 : i32, i32
  }
  func.func @transform_3(%arg0: i32) -> (i32, i32, i32) {
    %c0_i32 = arith.constant 0 : i32
    %c0_i32_0 = arith.constant 0 : i32
    %c0_i32_1 = arith.constant 0 : i32
    return %arg0, %c0_i32, %c0_i32_0 : i32, i32, i32
  }
}

module attributes {stable_mosaic.version = 11 : i64} {
  func.func @_stage2_skip_kernel(%arg0: i32, %arg1: memref<1x16x64xbf16, #tpu.memory_space<vmem>>, %arg2: memref<3x64x128xbf16, #tpu.memory_space<vmem>>, %arg3: memref<3x128x128xbf16, #tpu.memory_space<vmem>>, %arg4: memref<64x128xbf16, #tpu.memory_space<vmem>>, %arg5: memref<5x128xf32, #tpu.memory_space<vmem>>, %arg6: memref<1x16x128xbf16, #tpu.memory_space<vmem>>, %arg7: memref<1x2x128xf32, #tpu.memory_space<vmem>>) attributes {dimension_semantics = [#tpu.dimension_semantics<parallel>], iteration_bounds = array<i64: 2>, scalar_prefetch = 0 : i64, scratch_operands = 0 : i64, tpu.core_type = #tpu.core_type<tc>, window_params = [{transform_indices = @transform_0, window_bounds = array<i64: 1, 16, 64>}, {pipeline_mode = #tpu.pipeline_mode<synchronous>, transform_indices = @transform_1, window_bounds = array<i64: 3, 64, 128>}, {pipeline_mode = #tpu.pipeline_mode<synchronous>, transform_indices = @transform_2, window_bounds = array<i64: 3, 128, 128>}, {pipeline_mode = #tpu.pipeline_mode<synchronous>, transform_indices = @transform_3, window_bounds = array<i64: 64, 128>}, {pipeline_mode = #tpu.pipeline_mode<synchronous>, transform_indices = @transform_4, window_bounds = array<i64: 5, 128>}, {transform_indices = @transform_5, window_bounds = array<i64: 1, 16, 128>}, {transform_indices = @transform_6, window_bounds = array<i64: 1, 2, 128>}]} {
    %c0 = arith.constant 0 : index
    %c0_0 = arith.constant 0 : index
    %c0_1 = arith.constant 0 : index
    %0 = vector.load %arg1[%c0, %c0_0, %c0_1] : memref<1x16x64xbf16, #tpu.memory_space<vmem>>, vector<1x16x64xbf16>
    %1 = vector.shape_cast %0 : vector<1x16x64xbf16> to vector<16x64xbf16>
    %c0_2 = arith.constant 0 : index
    %c0_3 = arith.constant 0 : index
    %c0_4 = arith.constant 0 : index
    %2 = vector.load %arg2[%c0_2, %c0_3, %c0_4] : memref<3x64x128xbf16, #tpu.memory_space<vmem>>, vector<1x64x128xbf16>
    %3 = vector.shape_cast %2 : vector<1x64x128xbf16> to vector<64x128xbf16>
    %cst = arith.constant dense<0.000000e+00> : vector<16x128xf32>
    %4 = tpu.matmul %1, %3, %cst {dimension_numbers = #tpu.dot_dimension_numbers<[1], [0], [0], [1], [0, 0, 1, 1], [], []>} : vector<16x64xbf16>, vector<64x128xbf16>, vector<16x128xf32> -> vector<16x128xf32>
    %cst_5 = arith.constant 0.000000e+00 : f32
    %5 = vector.broadcast %cst_5 : f32 to vector<1x128xf32>
    %6 = vector.extract_strided_slice %4 {offsets = [0, 0], sizes = [15, 128], strides = [1, 1]} : vector<16x128xf32> to vector<15x128xf32>
    %7 = tpu.concatenate %5, %6 in 0 : vector<1x128xf32>, vector<15x128xf32> -> vector<16x128xf32>
    %c1 = arith.constant 1 : index
    %c0_6 = arith.constant 0 : index
    %c0_7 = arith.constant 0 : index
    %8 = vector.load %arg2[%c1, %c0_6, %c0_7] : memref<3x64x128xbf16, #tpu.memory_space<vmem>>, vector<1x64x128xbf16>
    %9 = vector.shape_cast %8 : vector<1x64x128xbf16> to vector<64x128xbf16>
    %cst_8 = arith.constant dense<0.000000e+00> : vector<16x128xf32>
    %10 = tpu.matmul %1, %9, %cst_8 {dimension_numbers = #tpu.dot_dimension_numbers<[1], [0], [0], [1], [0, 0, 1, 1], [], []>} : vector<16x64xbf16>, vector<64x128xbf16>, vector<16x128xf32> -> vector<16x128xf32>
    %11 = arith.addf %7, %10 : vector<16x128xf32>
    %c2 = arith.constant 2 : index
    %c0_9 = arith.constant 0 : index
    %c0_10 = arith.constant 0 : index
    %12 = vector.load %arg2[%c2, %c0_9, %c0_10] : memref<3x64x128xbf16, #tpu.memory_space<vmem>>, vector<1x64x128xbf16>
    %13 = vector.shape_cast %12 : vector<1x64x128xbf16> to vector<64x128xbf16>
    %cst_11 = arith.constant dense<0.000000e+00> : vector<16x128xf32>
    %14 = tpu.matmul %1, %13, %cst_11 {dimension_numbers = #tpu.dot_dimension_numbers<[1], [0], [0], [1], [0, 0, 1, 1], [], []>} : vector<16x64xbf16>, vector<64x128xbf16>, vector<16x128xf32> -> vector<16x128xf32>
    %cst_12 = arith.constant 0.000000e+00 : f32
    %15 = vector.broadcast %cst_12 : f32 to vector<1x128xf32>
    %16 = vector.extract_strided_slice %14 {offsets = [1, 0], sizes = [15, 128], strides = [1, 1]} : vector<16x128xf32> to vector<15x128xf32>
    %17 = tpu.concatenate %16, %15 in 0 : vector<15x128xf32>, vector<1x128xf32> -> vector<16x128xf32>
    %18 = arith.addf %11, %17 : vector<16x128xf32>
    %c0_13 = arith.constant 0 : index
    %c0_14 = arith.constant 0 : index
    %19 = vector.load %arg5[%c0_13, %c0_14] : memref<5x128xf32, #tpu.memory_space<vmem>>, vector<1x128xf32>
    %20 = vector.broadcast %19 : vector<1x128xf32> to vector<16x128xf32>
    %21 = arith.addf %18, %20 : vector<16x128xf32>
    %cst_15 = arith.constant 0.000000e+00 : f32
    %22 = vector.broadcast %cst_15 : f32 to vector<16x128xf32>
    %23 = arith.maximumf %21, %22 : vector<16x128xf32>
    %c1_16 = arith.constant 1 : index
    %c0_17 = arith.constant 0 : index
    %24 = vector.load %arg5[%c1_16, %c0_17] : memref<5x128xf32, #tpu.memory_space<vmem>>, vector<1x128xf32>
    %25 = vector.broadcast %24 : vector<1x128xf32> to vector<16x128xf32>
    %26 = arith.mulf %23, %25 : vector<16x128xf32>
    %c2_18 = arith.constant 2 : index
    %c0_19 = arith.constant 0 : index
    %27 = vector.load %arg5[%c2_18, %c0_19] : memref<5x128xf32, #tpu.memory_space<vmem>>, vector<1x128xf32>
    %28 = vector.broadcast %27 : vector<1x128xf32> to vector<16x128xf32>
    %29 = arith.addf %26, %28 : vector<16x128xf32>
    %30 = arith.truncf %29 : vector<16x128xf32> to vector<16x128xbf16>
    %c0_20 = arith.constant 0 : index
    %c0_21 = arith.constant 0 : index
    %c0_22 = arith.constant 0 : index
    %31 = vector.load %arg3[%c0_20, %c0_21, %c0_22] : memref<3x128x128xbf16, #tpu.memory_space<vmem>>, vector<1x128x128xbf16>
    %32 = vector.shape_cast %31 : vector<1x128x128xbf16> to vector<128x128xbf16>
    %cst_23 = arith.constant dense<0.000000e+00> : vector<16x128xf32>
    %33 = tpu.matmul %30, %32, %cst_23 {dimension_numbers = #tpu.dot_dimension_numbers<[1], [0], [0], [1], [0, 0, 1, 1], [], []>} : vector<16x128xbf16>, vector<128x128xbf16>, vector<16x128xf32> -> vector<16x128xf32>
    %cst_24 = arith.constant 0.000000e+00 : f32
    %34 = vector.broadcast %cst_24 : f32 to vector<1x128xf32>
    %35 = vector.extract_strided_slice %33 {offsets = [0, 0], sizes = [15, 128], strides = [1, 1]} : vector<16x128xf32> to vector<15x128xf32>
    %36 = tpu.concatenate %34, %35 in 0 : vector<1x128xf32>, vector<15x128xf32> -> vector<16x128xf32>
    %c1_25 = arith.constant 1 : index
    %c0_26 = arith.constant 0 : index
    %c0_27 = arith.constant 0 : index
    %37 = vector.load %arg3[%c1_25, %c0_26, %c0_27] : memref<3x128x128xbf16, #tpu.memory_space<vmem>>, vector<1x128x128xbf16>
    %38 = vector.shape_cast %37 : vector<1x128x128xbf16> to vector<128x128xbf16>
    %cst_28 = arith.constant dense<0.000000e+00> : vector<16x128xf32>
    %39 = tpu.matmul %30, %38, %cst_28 {dimension_numbers = #tpu.dot_dimension_numbers<[1], [0], [0], [1], [0, 0, 1, 1], [], []>} : vector<16x128xbf16>, vector<128x128xbf16>, vector<16x128xf32> -> vector<16x128xf32>
    %40 = arith.addf %36, %39 : vector<16x128xf32>
    %c2_29 = arith.constant 2 : index
    %c0_30 = arith.constant 0 : index
    %c0_31 = arith.constant 0 : index
    %41 = vector.load %arg3[%c2_29, %c0_30, %c0_31] : memref<3x128x128xbf16, #tpu.memory_space<vmem>>, vector<1x128x128xbf16>
    %42 = vector.shape_cast %41 : vector<1x128x128xbf16> to vector<128x128xbf16>
    %cst_32 = arith.constant dense<0.000000e+00> : vector<16x128xf32>
    %43 = tpu.matmul %30, %42, %cst_32 {dimension_numbers = #tpu.dot_dimension_numbers<[1], [0], [0], [1], [0, 0, 1, 1], [], []>} : vector<16x128xbf16>, vector<128x128xbf16>, vector<16x128xf32> -> vector<16x128xf32>
    %cst_33 = arith.constant 0.000000e+00 : f32
    %44 = vector.broadcast %cst_33 : f32 to vector<1x128xf32>
    %45 = vector.extract_strided_slice %43 {offsets = [1, 0], sizes = [15, 128], strides = [1, 1]} : vector<16x128xf32> to vector<15x128xf32>
    %46 = tpu.concatenate %45, %44 in 0 : vector<15x128xf32>, vector<1x128xf32> -> vector<16x128xf32>
    %47 = arith.addf %40, %46 : vector<16x128xf32>
    %c3 = arith.constant 3 : index
    %c0_34 = arith.constant 0 : index
    %48 = vector.load %arg5[%c3, %c0_34] : memref<5x128xf32, #tpu.memory_space<vmem>>, vector<1x128xf32>
    %49 = vector.broadcast %48 : vector<1x128xf32> to vector<16x128xf32>
    %50 = arith.addf %47, %49 : vector<16x128xf32>
    %cst_35 = arith.constant 0.000000e+00 : f32
    %51 = vector.broadcast %cst_35 : f32 to vector<16x128xf32>
    %52 = arith.maximumf %50, %51 : vector<16x128xf32>
    %c0_36 = arith.constant 0 : index
    %c0_37 = arith.constant 0 : index
    %53 = vector.load %arg4[%c0_36, %c0_37] : memref<64x128xbf16, #tpu.memory_space<vmem>>, vector<64x128xbf16>
    %cst_38 = arith.constant dense<0.000000e+00> : vector<16x128xf32>
    %54 = tpu.matmul %1, %53, %cst_38 {dimension_numbers = #tpu.dot_dimension_numbers<[1], [0], [0], [1], [0, 0, 1, 1], [], []>} : vector<16x64xbf16>, vector<64x128xbf16>, vector<16x128xf32> -> vector<16x128xf32>
    %c4 = arith.constant 4 : index
    %c0_39 = arith.constant 0 : index
    %55 = vector.load %arg5[%c4, %c0_39] : memref<5x128xf32, #tpu.memory_space<vmem>>, vector<1x128xf32>
    %56 = vector.broadcast %55 : vector<1x128xf32> to vector<16x128xf32>
    %57 = arith.addf %54, %56 : vector<16x128xf32>
    %58 = arith.addf %52, %57 : vector<16x128xf32>
    %59 = arith.truncf %58 : vector<16x128xf32> to vector<16x128xbf16>
    %c0_40 = arith.constant 0 : index
    %c0_41 = arith.constant 0 : index
    %c0_42 = arith.constant 0 : index
    %60 = vector.load %arg6[%c0_40, %c0_41, %c0_42] : memref<1x16x128xbf16, #tpu.memory_space<vmem>>, vector<1x16x128xbf16>
    %61 = vector.shape_cast %60 : vector<1x16x128xbf16> to vector<16x128xbf16>
    %62 = vector.shape_cast %59 : vector<16x128xbf16> to vector<1x16x128xbf16>
    tpu.vector_store %arg6[%c0_40, %c0_41, %c0_42], %62 {strides = array<i32>} : memref<1x16x128xbf16, #tpu.memory_space<vmem>>, vector<1x16x128xbf16>,
    %cst_43 = arith.constant dense<0.000000e+00> : vector<128xf32>
    %63 = vector.multi_reduction <add>, %58, %cst_43 [0] : vector<16x128xf32> to vector<128xf32>
    %64 = vector.shape_cast %63 : vector<128xf32> to vector<1x128xf32>
    %65 = arith.mulf %58, %58 : vector<16x128xf32>
    %cst_44 = arith.constant dense<0.000000e+00> : vector<128xf32>
    %66 = vector.multi_reduction <add>, %65, %cst_44 [0] : vector<16x128xf32> to vector<128xf32>
    %67 = vector.shape_cast %66 : vector<128xf32> to vector<1x128xf32>
    %68 = tpu.concatenate %64, %67 in 0 : vector<1x128xf32>, vector<1x128xf32> -> vector<2x128xf32>
    %c0_45 = arith.constant 0 : index
    %c0_46 = arith.constant 0 : index
    %c0_47 = arith.constant 0 : index
    %69 = vector.load %arg7[%c0_45, %c0_46, %c0_47] : memref<1x2x128xf32, #tpu.memory_space<vmem>>, vector<1x2x128xf32>
    %70 = vector.shape_cast %69 : vector<1x2x128xf32> to vector<2x128xf32>
    %71 = vector.shape_cast %68 : vector<2x128xf32> to vector<1x2x128xf32>
    tpu.vector_store %arg7[%c0_45, %c0_46, %c0_47], %71 {strides = array<i32>} : memref<1x2x128xf32, #tpu.memory_space<vmem>>, vector<1x2x128xf32>,
    return
  }
  func.func @transform_0(%arg0: i32) -> (i32, i32, i32) {
    %c0_i32 = arith.constant 0 : i32
    %c0_i32_0 = arith.constant 0 : i32
    %c0_i32_1 = arith.constant 0 : i32
    return %arg0, %c0_i32, %c0_i32_0 : i32, i32, i32
  }
  func.func @transform_1(%arg0: i32) -> (i32, i32, i32) {
    %c0_i32 = arith.constant 0 : i32
    %c0_i32_0 = arith.constant 0 : i32
    %c0_i32_1 = arith.constant 0 : i32
    %c0_i32_2 = arith.constant 0 : i32
    return %c0_i32, %c0_i32_0, %c0_i32_1 : i32, i32, i32
  }
  func.func @transform_2(%arg0: i32) -> (i32, i32, i32) {
    %c0_i32 = arith.constant 0 : i32
    %c0_i32_0 = arith.constant 0 : i32
    %c0_i32_1 = arith.constant 0 : i32
    %c0_i32_2 = arith.constant 0 : i32
    return %c0_i32, %c0_i32_0, %c0_i32_1 : i32, i32, i32
  }
  func.func @transform_3(%arg0: i32) -> (i32, i32) {
    %c0_i32 = arith.constant 0 : i32
    %c0_i32_0 = arith.constant 0 : i32
    %c0_i32_1 = arith.constant 0 : i32
    return %c0_i32, %c0_i32_0 : i32, i32
  }
  func.func @transform_4(%arg0: i32) -> (i32, i32) {
    %c0_i32 = arith.constant 0 : i32
    %c0_i32_0 = arith.constant 0 : i32
    %c0_i32_1 = arith.constant 0 : i32
    return %c0_i32, %c0_i32_0 : i32, i32
  }
  func.func @transform_5(%arg0: i32) -> (i32, i32, i32) {
    %c0_i32 = arith.constant 0 : i32
    %c0_i32_0 = arith.constant 0 : i32
    %c0_i32_1 = arith.constant 0 : i32
    return %arg0, %c0_i32, %c0_i32_0 : i32, i32, i32
  }
  func.func @transform_6(%arg0: i32) -> (i32, i32, i32) {
    %c0_i32 = arith.constant 0 : i32
    %c0_i32_0 = arith.constant 0 : i32
    %c0_i32_1 = arith.constant 0 : i32
    return %arg0, %c0_i32, %c0_i32_0 : i32, i32, i32
  }
}

module attributes {stable_mosaic.version = 11 : i64} {
  func.func @_bn2_apply_kernel(%arg0: i32, %arg1: memref<1x16x128xbf16, #tpu.memory_space<vmem>>, %arg2: memref<2x128xf32, #tpu.memory_space<vmem>>, %arg3: memref<1x16x128xf32, #tpu.memory_space<vmem>>) attributes {dimension_semantics = [#tpu.dimension_semantics<parallel>], iteration_bounds = array<i64: 2>, scalar_prefetch = 0 : i64, scratch_operands = 0 : i64, tpu.core_type = #tpu.core_type<tc>, window_params = [{transform_indices = @transform_0, window_bounds = array<i64: 1, 16, 128>}, {pipeline_mode = #tpu.pipeline_mode<synchronous>, transform_indices = @transform_1, window_bounds = array<i64: 2, 128>}, {transform_indices = @transform_2, window_bounds = array<i64: 1, 16, 128>}]} {
    %c0 = arith.constant 0 : index
    %c0_0 = arith.constant 0 : index
    %c0_1 = arith.constant 0 : index
    %0 = vector.load %arg1[%c0, %c0_0, %c0_1] : memref<1x16x128xbf16, #tpu.memory_space<vmem>>, vector<1x16x128xbf16>
    %1 = vector.shape_cast %0 : vector<1x16x128xbf16> to vector<16x128xbf16>
    %2 = arith.extf %1 : vector<16x128xbf16> to vector<16x128xf32>
    %c0_2 = arith.constant 0 : index
    %c0_3 = arith.constant 0 : index
    %3 = vector.load %arg2[%c0_2, %c0_3] : memref<2x128xf32, #tpu.memory_space<vmem>>, vector<1x128xf32>
    %4 = vector.broadcast %3 : vector<1x128xf32> to vector<16x128xf32>
    %5 = arith.mulf %2, %4 : vector<16x128xf32>
    %c1 = arith.constant 1 : index
    %c0_4 = arith.constant 0 : index
    %6 = vector.load %arg2[%c1, %c0_4] : memref<2x128xf32, #tpu.memory_space<vmem>>, vector<1x128xf32>
    %7 = vector.broadcast %6 : vector<1x128xf32> to vector<16x128xf32>
    %8 = arith.addf %5, %7 : vector<16x128xf32>
    %c0_5 = arith.constant 0 : index
    %c0_6 = arith.constant 0 : index
    %c0_7 = arith.constant 0 : index
    %9 = vector.load %arg3[%c0_5, %c0_6, %c0_7] : memref<1x16x128xf32, #tpu.memory_space<vmem>>, vector<1x16x128xf32>
    %10 = vector.shape_cast %9 : vector<1x16x128xf32> to vector<16x128xf32>
    %11 = vector.shape_cast %8 : vector<16x128xf32> to vector<1x16x128xf32>
    tpu.vector_store %arg3[%c0_5, %c0_6, %c0_7], %11 {strides = array<i32>} : memref<1x16x128xf32, #tpu.memory_space<vmem>>, vector<1x16x128xf32>,
    return
  }
  func.func @transform_0(%arg0: i32) -> (i32, i32, i32) {
    %c0_i32 = arith.constant 0 : i32
    %c0_i32_0 = arith.constant 0 : i32
    %c0_i32_1 = arith.constant 0 : i32
    return %arg0, %c0_i32, %c0_i32_0 : i32, i32, i32
  }
  func.func @transform_1(%arg0: i32) -> (i32, i32) {
    %c0_i32 = arith.constant 0 : i32
    %c0_i32_0 = arith.constant 0 : i32
    %c0_i32_1 = arith.constant 0 : i32
    return %c0_i32, %c0_i32_0 : i32, i32
  }
  func.func @transform_2(%arg0: i32) -> (i32, i32, i32) {
    %c0_i32 = arith.constant 0 : i32
    %c0_i32_0 = arith.constant 0 : i32
    %c0_i32_1 = arith.constant 0 : i32
    return %arg0, %c0_i32, %c0_i32_0 : i32, i32, i32
  }
}

</mosaic_0001>

<bundles_post_ra>
// kernel: tile.38
= control target key start
LH: loop header
LB: loop body
LE: loop exit
PB: predicated region body
PF: predicated region fallthrough
CT: control target
= control target key end

     0   :  { %s28_s0 = inlined_call_operand.vmem [shape: f32[8], index: 0, kind: input, shape index: {}]   ;;  %s29_s1 = inlined_call_operand.vmem [shape: f32[16,8], index: 1, kind: output, shape index: {}]  }
   0x1   :  { %v4_v0 = vld [vmem:[%s28_s0] ss:$0 sm:$0xff] }
   0x2   :  { %5 = vst [vmem:[%s29_s1] sm:$0xff] %v4_v0  ;;  %8 = vst [vmem:[%s29_s1 + $0x8] sm:$0xff] %v4_v0 }

// kernel: tile.39
= control target key start
LH: loop header
LB: loop body
LE: loop exit
PB: predicated region body
PF: predicated region fallthrough
CT: control target
= control target key end

     0   :  { %s133_s10 = smov 120   ;;  %s134_s11 = smov 104   ;;  %vm3_vm0 = vcmask 64512   ;;  %vm9_vm1 = vcmask 1048512   ;;  %vm15_vm2 = vcmask 982912   ;;  %vm21_vm3 = vcmask 917312   ;;  %s209_s0 = inlined_call_operand.vmem [shape: f32[16,8], index: 0, kind: input, shape index: {}]   ;;  %s210_s1 = inlined_call_operand.vmem [shape: f32[1,128], index: 1, kind: output, shape index: {}]  }
   0x1   :  { %v103_v0 = vld [vmem:[%s209_s0 + $0xf] sm:$0x1]   ;;  %v105_v1 = vld [vmem:[%s209_s0 + $0xd] sm:$0x1]   ;;  %v104_v2 = vld [vmem:[%s209_s0 + $0xe] sm:$0x1]  }
   0x2   :  { %7 = vrot.lane.b32.xlu0 %v103_v0, %s133_s10  ;;  %19 = vrot.lane.b32.xlu1 %v105_v1, %s134_s11  ;;  %v106_v3 = vld [vmem:[%s209_s0 + $0xc] sm:$0x1]   ;;  %s135_s16 = smov 112   ;;  %s136_s17 = smov 96   ;;  %v107_v4 = vld [vmem:[%s209_s0 + $0xb] sm:$0x1]  }
   0x3   :  { %v108_v5 = vld [vmem:[%s209_s0 + $0xa] sm:$0x1]   ;;  %v2_v6 = vld [vmem:[%s209_s0] sm:$0x1]   ;;  %s137_s24 = smov 88   ;;  %s138_s25 = smov 80  }
   0x4   :  { %4 = vst.msk [vmem:[#allocation0] sm:$0x1] %vm3_vm0, %v2_v6   ;;  %v109_v7 = vld [vmem:[%s209_s0 + $0x9] sm:$0x1]   ;;  %v110_v8 = vld [vmem:[%s209_s0 + $0x8] sm:$0x1]  }
   0x5   :  { %s139_s30 = smov 72   ;;  %s140_s2 = smov 64   ;;  %v111_v9 = vld [vmem:[%s209_s0 + $0x7] sm:$0x1]   ;;  %v112_v10 = vld [vmem:[%s209_s0 + $0x6] sm:$0x1]  }
   0x6   :  { %13 = vrot.lane.b32.xlu0 %v104_v2, %s135_s16  ;;  %25 = vrot.lane.b32.xlu1 %v106_v3, %s136_s17  ;;  %s141_s7 = smov 56   ;;  %s142_s8 = smov 48   ;;  %v113_v11 = vld [vmem:[%s209_s0 + $0x5] sm:$0x1]   ;;  %v114_v12 = vld [vmem:[%s209_s0 + $0x4] sm:$0x1]  }
   0x7   :  { %s143_s13 = smov 40   ;;  %s144_s14 = smov 32   ;;  %v115_v13 = vld [vmem:[%s209_s0 + $0x3] sm:$0x1]   ;;  %v116_v14 = vld [vmem:[%s209_s0 + $0x2] sm:$0x1]  }
   0x8   :  { %s145_s19 = smov 24   ;;  %s146_s20 = smov 16   ;;  %v117_v15 = vld [vmem:[%s209_s0 + $0x1] sm:$0x1]   ;;  %vm27_vm4 = vcmask 851712   ;;  %vm33_vm5 = vcmask 786112  }
   0x9   :  { %s147_s0 = smov 8   ;;  %vm39_vm6 = vcmask 720512   ;;  %vm45_vm7 = vcmask 654912   ;;  %vm51_vm8 = vcmask 589312   ;;  %vm57_vm9 = vcmask 523712  }
   0xa   :  { %31 = vrot.lane.b32.xlu0 %v107_v4, %s137_s24  ;;  %37 = vrot.lane.b32.xlu1 %v108_v5, %s138_s25  ;;  %vm63_vm10 = vcmask 458112   ;;  %vm69_vm11 = vcmask 392512   ;;  %vm75_vm12 = vcmask 326912   ;;  %vm81_vm13 = vcmask 261312  }
   0xb   :  { %vm87_vm14 = vcmask 195712   ;;  %vm93_vm15 = vcmask 130112  }
   0xe   :  { %43 = vrot.lane.b32.xlu0 %v109_v7, %s139_s30  ;;  %49 = vrot.lane.b32.xlu1 %v110_v8, %s140_s2 }
  0x12   :  { %55 = vrot.lane.b32.xlu0 %v111_v9, %s141_s7  ;;  %61 = vrot.lane.b32.xlu1 %v112_v10, %s142_s8 }
  0x16   :  { %67 = vrot.lane.b32.xlu0 %v113_v11, %s143_s13  ;;  %73 = vrot.lane.b32.xlu1 %v114_v12, %s144_s14 }
  0x1a   :  { %79 = vrot.lane.b32.xlu0 %v115_v13, %s145_s19  ;;  %85 = vrot.lane.b32.xlu1 %v116_v14, %s146_s20 }
  0x1e   :  { %91 = vrot.lane.b32.xlu0 %v117_v15, %s147_s0 }
  0x74   :  { %v8_v16 = vpop.permute.xlu0 %7   ;;  %v20_v17 = vpop.permute.xlu1 %19  }
  0x75   :  { %10 = vst.msk [vmem:[#allocation0] sm:$0x1] %vm9_vm1, %v8_v16  }
  0x78   :  { %v14_v18 = vpop.permute.xlu0 %13   ;;  %v26_v19 = vpop.permute.xlu1 %25  }
  0x79   :  { %16 = vst.msk [vmem:[#allocation0] sm:$0x1] %vm15_vm2, %v14_v18  }
  0x7a   :  { %22 = vst.msk [vmem:[#allocation0] sm:$0x1] %vm21_vm3, %v20_v17  }
  0x7b   :  { %28 = vst.msk [vmem:[#allocation0] sm:$0x1] %vm27_vm4, %v26_v19  }
  0x7c   :  { %v32_v20 = vpop.permute.xlu0 %31   ;;  %v38_v21 = vpop.permute.xlu1 %37  }
  0x7d   :  { %34 = vst.msk [vmem:[#allocation0] sm:$0x1] %vm33_vm5, %v32_v20  }
  0x7e   :  { %40 = vst.msk [vmem:[#allocation0] sm:$0x1] %vm39_vm6, %v38_v21  }
  0x80   :  { %v44_v22 = vpop.permute.xlu0 %43   ;;  %v50_v23 = vpop.permute.xlu1 %49  }
  0x81   :  { %46 = vst.msk [vmem:[#allocation0] sm:$0x1] %vm45_vm7, %v44_v22  }
  0x82   :  { %52 = vst.msk [vmem:[#allocation0] sm:$0x1] %vm51_vm8, %v50_v23  }
  0x84   :  { %v56_v24 = vpop.permute.xlu0 %55   ;;  %v62_v25 = vpop.permute.xlu1 %61  }
  0x85   :  { %58 = vst.msk [vmem:[#allocation0] sm:$0x1] %vm57_vm9, %v56_v24  }
  0x86   :  { %64 = vst.msk [vmem:[#allocation0] sm:$0x1] %vm63_vm10, %v62_v25  }
  0x88   :  { %v68_v26 = vpop.permute.xlu0 %67   ;;  %v74_v27 = vpop.permute.xlu1 %73  }
  0x89   :  { %70 = vst.msk [vmem:[#allocation0] sm:$0x1] %vm69_vm11, %v68_v26  }
  0x8a   :  { %76 = vst.msk [vmem:[#allocation0] sm:$0x1] %vm75_vm12, %v74_v27  }
  0x8c   :  { %v80_v28 = vpop.permute.xlu0 %79   ;;  %v86_v29 = vpop.permute.xlu1 %85  }
  0x8d   :  { %82 = vst.msk [vmem:[#allocation0] sm:$0x1] %vm81_vm13, %v80_v28  }
  0x8e   :  { %88 = vst.msk [vmem:[#allocation0] sm:$0x1] %vm87_vm14, %v86_v29  }
  0x90   :  { %v92_v30 = vpop.permute.xlu0 %91  }
  0x91   :  { %94 = vst.msk [vmem:[#allocation0] sm:$0x1] %vm93_vm15, %v92_v30  }
  0x98   :  { %v99_v31 = vld [vmem:[#allocation0] sm:$0x1] }
  0x99   :  { %102 = vst [vmem:[%s210_s1] sm:$0x1] %v99_v31 }

// kernel: residual_layer_forward.3
= control target key start
LH: loop header
LB: loop body
LE: loop exit
PB: predicated region body
PF: predicated region fallthrough
CT: control target
= control target key end

     0   :  { %s654_s12 = smov 0   ;;  %s723_s0 = inlined_call_operand.vmem [shape: bf16[2,16,64], index: 0, kind: input, shape index: {}]   ;;  %s724_s1 = inlined_call_operand.vmem [shape: bf16[3,64,128], index: 1, kind: input, shape index: {}]   ;;  %s725_s2 = inlined_call_operand.vmem [shape: f32[1,128], index: 2, kind: input, shape index: {}]   ;;  %s726_s3 = inlined_call_operand.vmem [shape: f32[2,2,128], index: 3, kind: output, shape index: {}]  }
   0x1 LB: > { %s506_s13 = sadd.s32 4294967295, %s630_s12   ;;  %p510_p0 = scmp.ge.s32.totalorder %s630_s12, 1  ;;  %s630_s12 = sphi %s654_s12, %s13_s12  }
   0x2   : > { %p137_p1 = scmp.lt.s32.totalorder %s630_s12, 3 }
   0x4   : > { %p138_p2 = pnand %p510_p0, %p137_p1 }
   0x5   : > { %p160_p3 = scmp.lt.s32.totalorder (!%p138_p2), %s506_s13, 1 }
   0x6   : > { %141 = sbr.rel (%p138_p2) target bundleno = 268 (0x10c), region = 32 }
   0xb   : > { %v611_v0 = vld [vmem:[%s724_s1 + $0x18] sm:$0xff]   ;;  %v632_v1 = vmov 0.0   ;;  %v613_v3 = vld [vmem:[%s724_s1 + $0x10] sm:$0xff]   ;;  %vm633_vm0 = vmmov 0   ;;  %s728_s13 = smov (!%p160_p3, %s506_s13), 1  ;;  %v615_v5 = vld [vmem:[%s724_s1 + $0x8] sm:$0xff]  }
   0xc   : > { %565 = vmatprep.subr.bf16.mxu0 %v632_v1  ;;  %577 = vmatprep.subr.bf16.mxu1 %v632_v1  ;;  %v612_v2 = vld [vmem:[%s724_s1 + $0x38] sm:$0xff]   ;;  %v614_v4 = vld [vmem:[%s724_s1 + $0x30] sm:$0xff]   ;;  %s549_s24 = sshll.u32 %s728_s13, 3  ;;  %v616_v6 = vld [vmem:[%s724_s1 + $0x28] sm:$0xff]   ;;  %vm209_vm1 = vcmask 523264   ;;  %vm256_vm2 = vcmask 1040384  }
   0xd   : > { %566 = vmatpush3.bf16.msra.mxu0 %v611_v0  ;;  %573 = vmatprep.mubr.msk.bf16.mxu0 %vm633_vm0, %v632_v1  ;;  %s164_s29 = scalar_lea.vmem %s723_s0, %s549_s24  ;;  %v617_v7 = vld [vmem:[%s724_s1] sm:$0xff]   ;;  %v620_v10 = vld [vmem:[%s724_s1 + $0x58] sm:$0xff]   ;;  %v621_v11 = vld [vmem:[%s724_s1 + $0x50] sm:$0xff]   ;;  %vm415_vm3 = vcmask 1046528   ;;  %s513_s19 = sshll.u32 %s728_s13, 1 }
   0xe   : > { %567 = vmatprep.subr.bf16.mxu0 %v632_v1  ;;  %578 = vmatpush3.bf16.msra.mxu1 %v612_v2  ;;  %v619_v8 = vld [vmem:[%s724_s1 + $0x20] sm:$0xff]   ;;  %v622_v12 = vld [vmem:[%s724_s1 + $0x48] sm:$0xff]   ;;  %s168_s22 = scalar_lea.vmem %s726_s3, %s513_s19 }
   0xf   : > { %579 = vmatprep.subr.bf16.mxu1 %v632_v1  ;;  %585 = vmatprep.mubr.msk.bf16.mxu1 %vm633_vm0, %v632_v1  ;;  %v618_v9 = vld [vmem:[%s164_s29] sm:$0xff]  }
  0x10   : > { %v623_v13 = vld [vmem:[%s724_s1 + $0x40] sm:$0xff]  }
  0x11   : > { %568 = vmatpush3.bf16.msra.mxu0 %v613_v3  ;;  %v546_v36 = vld [vmem:[%s725_s2] ss:$0 sm:$0xff] }
  0x12   : > { %569 = vmatprep.subr.bf16.mxu0 %v632_v1  ;;  %580 = vmatpush3.bf16.msra.mxu1 %v614_v4 }
  0x13   : > { %581 = vmatprep.subr.bf16.mxu1 %v632_v1 }
  0x15   : > { %570 = vmatpush3.bf16.msra.mxu0 %v615_v5 }
  0x16   : > { %571 = vmatprep.subr.bf16.mxu0 %v632_v1  ;;  %582 = vmatpush3.bf16.msra.mxu1 %v616_v6 }
  0x17   : > { %583 = vmatprep.subr.bf16.mxu1 %v632_v1 }
  0x19   : > { %572 = vmatpush3.bf16.msra.mxu0 %v617_v7 }
  0x1a   : > { %584 = vmatpush3.bf16.msra.mxu1 %v619_v8  ;;  %589 = vmatprep.subr.bf16.mxu0 %v632_v1 }
  0x1c   : > { %574 = vmatmul.mubr.msk.bf16.vlgmr.msra.gmra.mxu0 %vm209_vm1, %v618_v9 }
  0x1d   : > { %590 = vmatpush3.bf16.msra.mxu0 %v620_v10  ;;  %586 = vmatmul.mubr.msk.bf16.vlgmr.msra.gmra.mxu1 %vm209_vm1, %v618_v9 }
  0x1e   : > { %591 = vmatprep.subr.bf16.mxu0 %v632_v1  ;;  %597 = vmatprep.mubr.msk.bf16.mxu0 %vm633_vm0, %v632_v1 }
  0x21   : > { %592 = vmatpush3.bf16.msra.mxu0 %v621_v11 }
  0x22   : > { %593 = vmatprep.subr.bf16.mxu0 %v632_v1 }
  0x25   : > { %594 = vmatpush3.bf16.msra.mxu0 %v622_v12 }
  0x26   : > { %595 = vmatprep.subr.bf16.mxu0 %v632_v1 }
  0x29   : > { %596 = vmatpush3.bf16.msra.mxu0 %v623_v13 }
  0x2c   : > { %598 = vmatmul.mubr.msk.bf16.vlgmr.msra.gmra.mxu0 %vm209_vm1, %v618_v9 }
  0xdc   : > { %v247_v14 = vpop.f32.mrf.mxu0 }
  0xdd   : > { %v330_v15 = vpop.f32.mrf.mxu1  ;;  %v257_v22 = vrot.slane %v247_v14, 7 }
  0xde   : > { %v575_v16 = vpop.f32.mrf.mxu0 }
  0xdf   : > { %v587_v17 = vpop.f32.mrf.mxu1  ;;  %v262_v26 = vsel %vm256_vm2, 0.0, %v257_v22 }
  0xe0   : > { %v250_v18 = vpop.f32.mrf.mxu0  ;;  %v337_v31 = vadd.f32 %v330_v15, %v262_v26 }
  0xe1   : > { %v333_v19 = vpop.f32.mrf.mxu1  ;;  %v258_v23 = vrot.slane %v250_v18, 7 }
  0xe2   : > { %v576_v20 = vpop.f32.mrf.mxu0 }
  0xe3   : > { %v588_v21 = vpop.f32.mrf.mxu1  ;;  %v259_v27 = vsel %vm256_vm2, %v257_v22, %v258_v23 }
  0xe4   : > { %v338_v32 = vadd.f32 %v333_v19, %v259_v27 }
  0xec   : > { %v406_v24 = vpop.f32.mrf.mxu0 }
  0xed   : > { %v416_v29 = vrot.slane %v406_v24, 1 }
  0xee   : > { %v599_v25 = vpop.f32.mrf.mxu0 }
  0xf0   : > { %v409_v28 = vpop.f32.mrf.mxu0 }
  0xf1   : > { %v417_v30 = vrot.slane %v409_v28, 1 }
  0xf2   : > { %v600_v33 = vpop.f32.mrf.mxu0 }
  0xf3   : > { %v418_v34 = vsel %vm415_vm3, %v416_v29, %v417_v30  ;;  %v421_v35 = vsel %vm415_vm3, %v417_v30, 0.0 }
  0xf4   : > { %v422_v37 = vadd.f32 %v418_v34, %v337_v31  ;;  %v423_v38 = vadd.f32 %v421_v35, %v338_v32 }
  0xf6   : > { %v431_v39 = vadd.f32 %v546_v36, %v422_v37  ;;  %v432_v40 = vadd.f32 %v546_v36, %v423_v38 }
  0xf8   : > { %v433_v41 = vmax.f32 %v431_v39, 0.0  ;;  %v434_v42 = vmax.f32 %v432_v40, 0.0 }
  0xfa   : > { %v435_v43 = vadd.f32 %v434_v42, %v433_v41  ;;  %v442_v44 = vmul.f32 %v433_v41, %v433_v41  ;;  %v443_v45 = vmul.f32 %v434_v42, %v434_v42 }
  0xfc   : > { %v436_v46 = vrot.slane %v435_v43, 4  ;;  %v444_v47 = vadd.f32 %v443_v45, %v442_v44 }
  0xfe   : > { %v437_v48 = vadd.f32 %v436_v46, %v435_v43  ;;  %v445_v49 = vrot.slane %v444_v47, 4 }
 0x100   : > { %v438_v50 = vrot.slane %v437_v48, 2  ;;  %v446_v51 = vadd.f32 %v445_v49, %v444_v47 }
 0x102   : > { %v439_v52 = vadd.f32 %v438_v50, %v437_v48  ;;  %v447_v53 = vrot.slane %v446_v51, 2 }
 0x104   : > { %v440_v54 = vrot.slane %v439_v52, 1  ;;  %v448_v55 = vadd.f32 %v447_v53, %v446_v51 }
 0x106   : > { %v449_v56 = vrot.slane %v448_v55, 1  ;;  %v441_v57 = vadd.f32 %v440_v54, %v439_v52 }
 0x108   : > { %v450_v58 = vadd.f32 %v449_v56, %v448_v55 }
 0x10a   : > { %v451_v59 = vsel %vm256_vm2, %v441_v57, %v450_v58 }
 0x10b   : > { %452 = vst [vmem:[%s168_s22] sm:$0x3] %v451_v59 }
 0x10c PF: > { %s13_s12 = sadd.s32 1, %s630_s12  }
 0x10d   : > { %p10_p4 = scmp.ge.s32.totalorder %s13_s12, 4  }
 0x10f   :  { %12 = sbr.rel (!%p10_p4) target bundleno = 1 (0x1), region = 64 }

// kernel: residual_layer_forward.4
= control target key start
LH: loop header
LB: loop body
LE: loop exit
PB: predicated region body
PF: predicated region fallthrough
CT: control target
= control target key end

     0   :  { %s1454_s21 = smov 0   ;;  %s1690_s0 = inlined_call_operand.vmem [shape: bf16[2,16,64], index: 0, kind: input, shape index: {}]   ;;  %s1691_s1 = inlined_call_operand.vmem [shape: bf16[3,64,128], index: 1, kind: input, shape index: {}]   ;;  %s1692_s2 = inlined_call_operand.vmem [shape: bf16[3,128,128], index: 2, kind: input, shape index: {}]   ;;  %s1693_s3 = inlined_call_operand.vmem [shape: bf16[64,128], index: 3, kind: input, shape index: {}]   ;;  %s1694_s4 = inlined_call_operand.vmem [shape: f32[5,128], index: 4, kind: input, shape index: {}]   ;;  %s1695_s5 = inlined_call_operand.vmem [shape: bf16[2,16,128], index: 5, kind: output, shape index: {0}]   ;;  %s1696_s6 = inlined_call_operand.vmem [shape: f32[2,2,128], index: 6, kind: output, shape index: {1}]  }
   0x1 LB: > { %s1082_s22 = sadd.s32 4294967295, %s1415_s21   ;;  %p1086_p0 = scmp.ge.s32.totalorder %s1415_s21, 1  ;;  %s1415_s21 = sphi %s1454_s21, %s17_s21  }
   0x2   : > { %p215_p1 = scmp.lt.s32.totalorder %s1415_s21, 3 }
   0x4   : > { %p216_p2 = pnand %p1086_p0, %p215_p1 }
   0x5   : > { %p249_p3 = scmp.lt.s32.totalorder (!%p216_p2), %s1082_s22, 1 }
   0x6   : > { %219 = sbr.rel (%p216_p2) target bundleno = 514 (0x202), region = 40 }
   0xb   : > { %v1368_v0 = vld [vmem:[%s1691_s1 + $0x18] sm:$0xff]   ;;  %v1417_v1 = vmov 0.0   ;;  %v1370_v3 = vld [vmem:[%s1691_s1 + $0x10] sm:$0xff]   ;;  %vm1418_vm0 = vmmov 0   ;;  %s1698_s22 = smov (!%p249_p3, %s1082_s22), 1  ;;  %v1372_v5 = vld [vmem:[%s1691_s1 + $0x8] sm:$0xff]  }
   0xc   : > { %1250 = vmatprep.subr.bf16.mxu0 %v1417_v1  ;;  %1262 = vmatprep.subr.bf16.mxu1 %v1417_v1  ;;  %v1369_v2 = vld [vmem:[%s1691_s1 + $0x38] sm:$0xff]   ;;  %v1371_v4 = vld [vmem:[%s1691_s1 + $0x30] sm:$0xff]   ;;  %s1194_s9 = sshll.u32 %s1698_s22, 3  ;;  %v1373_v6 = vld [vmem:[%s1691_s1 + $0x28] sm:$0xff]   ;;  %vm303_vm1 = vcmask 523264   ;;  %vm350_vm2 = vcmask 1040384  }
   0xd   : > { %1251 = vmatpush3.bf16.msra.mxu0 %v1368_v0  ;;  %1258 = vmatprep.mubr.msk.bf16.mxu0 %vm1418_vm0, %v1417_v1  ;;  %s253_s14 = scalar_lea.vmem %s1690_s0, %s1194_s9  ;;  %v1374_v7 = vld [vmem:[%s1691_s1] sm:$0xff]   ;;  %v1377_v10 = vld [vmem:[%s1691_s1 + $0x58] sm:$0xff]   ;;  %v1378_v11 = vld [vmem:[%s1691_s1 + $0x50] sm:$0xff]   ;;  %vm509_vm3 = vcmask 1046528   ;;  %s258_s11 = scalar_lea.vmem %s1695_s5, %s1194_s9 }
   0xe   : > { %1252 = vmatprep.subr.bf16.mxu0 %v1417_v1  ;;  %1263 = vmatpush3.bf16.msra.mxu1 %v1369_v2  ;;  %v1376_v8 = vld [vmem:[%s1691_s1 + $0x20] sm:$0xff]   ;;  %v1379_v12 = vld [vmem:[%s1691_s1 + $0x48] sm:$0xff]   ;;  %v1381_v14 = vld [vmem:[%s1692_s2 + $0x38] sm:$0xff]   ;;  %s1091_s12 = sshll.u32 %s1698_s22, 1 }
   0xf   : > { %1264 = vmatprep.subr.bf16.mxu1 %v1417_v1  ;;  %1270 = vmatprep.mubr.msk.bf16.mxu1 %vm1418_vm0, %v1417_v1  ;;  %v1505_v9 = vld [vmem:[%s253_s14] sm:$0xff]   ;;  %v1382_v15 = vld [vmem:[%s1692_s2 + $0x78] sm:$0xff]   ;;  %v1383_v16 = vld [vmem:[%s1692_s2 + $0x30] sm:$0xff]   ;;  %s262_s14 = scalar_lea.vmem %s1696_s6, %s1091_s12 }
  0x10   : > { %v1380_v13 = vld [vmem:[%s1691_s1 + $0x40] sm:$0xff]   ;;  %v1384_v17 = vld [vmem:[%s1692_s2 + $0x70] sm:$0xff]   ;;  %v1385_v18 = vld [vmem:[%s1692_s2 + $0x28] sm:$0xff]  }
  0x11   : > { %1253 = vmatpush3.bf16.msra.mxu0 %v1370_v3  ;;  %v1386_v19 = vld [vmem:[%s1692_s2 + $0x68] sm:$0xff]   ;;  %v1387_v20 = vld [vmem:[%s1692_s2 + $0x20] sm:$0xff]   ;;  %v1389_v22 = vld [vmem:[%s1692_s2 + $0x18] sm:$0xff]  }
  0x12   : > { %1254 = vmatprep.subr.bf16.mxu0 %v1417_v1  ;;  %1265 = vmatpush3.bf16.msra.mxu1 %v1371_v4  ;;  %v1388_v21 = vld [vmem:[%s1692_s2 + $0x60] sm:$0xff]   ;;  %v1390_v23 = vld [vmem:[%s1692_s2 + $0x58] sm:$0xff]   ;;  %v1391_v24 = vld [vmem:[%s1692_s2 + $0x10] sm:$0xff]  }
  0x13   : > { %1266 = vmatprep.subr.bf16.mxu1 %v1417_v1  ;;  %v1392_v25 = vld [vmem:[%s1692_s2 + $0x50] sm:$0xff]   ;;  %v1393_v26 = vld [vmem:[%s1692_s2 + $0x8] sm:$0xff]   ;;  %v1395_v28 = vld [vmem:[%s1692_s2] sm:$0xff]  }
  0x14   : > { %v1394_v27 = vld [vmem:[%s1692_s2 + $0x48] sm:$0xff]   ;;  %v1396_v29 = vld [vmem:[%s1692_s2 + $0x40] sm:$0xff]   ;;  %v1397_v2 = vld [vmem:[%s1692_s2 + $0xb8] sm:$0xff]  }
  0x15   : > { %1255 = vmatpush3.bf16.msra.mxu0 %v1372_v5  ;;  %v1124_v52 = vld [vmem:[%s1694_s4] ss:$0 sm:$0xff]  ;;  %v1125_v57 = vld [vmem:[%s1694_s4 + $0x1] ss:$0 sm:$0xff]  ;;  %v1126_v60 = vld [vmem:[%s1694_s4 + $0x2] ss:$0 sm:$0xff] }
  0x16   : > { %1256 = vmatprep.subr.bf16.mxu0 %v1417_v1  ;;  %1267 = vmatpush3.bf16.msra.mxu1 %v1373_v6  ;;  %v1402_v3 = vld [vmem:[%s1693_s3 + $0x18] sm:$0xff]   ;;  %v1398_v5 = vld [vmem:[%s1692_s2 + $0xb0] sm:$0xff]  }
  0x17   : > { %1268 = vmatprep.subr.bf16.mxu1 %v1417_v1  ;;  %v1404_v6 = vld [vmem:[%s1693_s3 + $0x10] sm:$0xff]  }
  0x19   : > { %1257 = vmatpush3.bf16.msra.mxu0 %v1374_v7  ;;  %v1399_v7 = vld [vmem:[%s1692_s2 + $0xa8] sm:$0xff]  }
  0x1a   : > { %1269 = vmatpush3.bf16.msra.mxu1 %v1376_v8  ;;  %1274 = vmatprep.subr.bf16.mxu0 %v1417_v1  ;;  %v1406_v8 = vld [vmem:[%s1693_s3 + $0x8] sm:$0xff]  }
  0x1b   : > { %1286 = vmatprep.subr.bf16.mxu1 %v1417_v1 }
  0x1c   : > { %1259 = vmatmul.mubr.msk.bf16.vlgmr.msra.gmra.mxu0 %vm303_vm1, %v1505_v9 }
  0x1d   : > { %1275 = vmatpush3.bf16.msra.mxu0 %v1377_v10  ;;  %1271 = vmatmul.mubr.msk.bf16.vlgmr.msra.gmra.mxu1 %vm303_vm1, %v1505_v9  ;;  %v1400_v10 = vld [vmem:[%s1692_s2 + $0xa0] sm:$0xff]  }
  0x1e   : > { %1276 = vmatprep.subr.bf16.mxu0 %v1417_v1  ;;  %1282 = vmatprep.mubr.msk.bf16.mxu0 %vm1418_vm0, %v1417_v1 }
  0x1f   : > { %1302 = vmatprep.mubr.msk.bf16.mxu1 %vm1418_vm0, %v1417_v1  ;;  %1287 = vmatpush3.bf16.msra.mxu1 %v1381_v14  ;;  %v1405_v14 = vld [vmem:[%s1692_s2 + $0x88] sm:$0xff]  }
  0x20   : > { %1288 = vmatprep.subr.bf16.mxu1 %v1417_v1 }
  0x21   : > { %1277 = vmatpush3.bf16.msra.mxu0 %v1378_v11  ;;  %v1408_v11 = vld [vmem:[%s1693_s3] sm:$0xff]  }
  0x22   : > { %1278 = vmatprep.subr.bf16.mxu0 %v1417_v1 }
  0x23   : > { %1289 = vmatpush3.bf16.msra.mxu1 %v1383_v16 }
  0x24   : > { %1290 = vmatprep.subr.bf16.mxu1 %v1417_v1 }
  0x25   : > { %1279 = vmatpush3.bf16.msra.mxu0 %v1379_v12  ;;  %v1401_v12 = vld [vmem:[%s1692_s2 + $0x98] sm:$0xff]  }
  0x26   : > { %1280 = vmatprep.subr.bf16.mxu0 %v1417_v1 }
  0x27   : > { %1291 = vmatpush3.bf16.msra.mxu1 %v1385_v18 }
  0x28   : > { %1292 = vmatprep.subr.bf16.mxu1 %v1417_v1 }
  0x29   : > { %1281 = vmatpush3.bf16.msra.mxu0 %v1380_v13  ;;  %v1403_v13 = vld [vmem:[%s1692_s2 + $0x90] sm:$0xff]  }
  0x2a   : > { %1306 = vmatprep.subr.bf16.mxu0 %v1417_v1 }
  0x2b   : > { %1293 = vmatpush3.bf16.msra.mxu1 %v1387_v20 }
  0x2c   : > { %1283 = vmatmul.mubr.msk.bf16.vlgmr.msra.gmra.mxu0 %vm303_vm1, %v1505_v9  ;;  %1294 = vmatprep.subr.bf16.mxu1 %v1417_v1 }
  0x2d   : > { %1322 = vmatprep.mubr.msk.bf16.mxu0 %vm1418_vm0, %v1417_v1  ;;  %1307 = vmatpush3.bf16.msra.mxu0 %v1382_v15  ;;  %v1407_v15 = vld [vmem:[%s1692_s2 + $0x80] sm:$0xff]  }
  0x2e   : > { %1308 = vmatprep.subr.bf16.mxu0 %v1417_v1 }
  0x2f   : > { %1295 = vmatpush3.bf16.msra.mxu1 %v1389_v22 }
  0x30   : > { %1296 = vmatprep.subr.bf16.mxu1 %v1417_v1 }
  0x31   : > { %1309 = vmatpush3.bf16.msra.mxu0 %v1384_v17 }
  0x32   : > { %1310 = vmatprep.subr.bf16.mxu0 %v1417_v1 }
  0x33   : > { %1297 = vmatpush3.bf16.msra.mxu1 %v1391_v24 }
  0x34   : > { %1298 = vmatprep.subr.bf16.mxu1 %v1417_v1 }
  0x35   : > { %1311 = vmatpush3.bf16.msra.mxu0 %v1386_v19 }
  0x36   : > { %1312 = vmatprep.subr.bf16.mxu0 %v1417_v1 }
  0x37   : > { %1299 = vmatpush3.bf16.msra.mxu1 %v1393_v26 }
  0x38   : > { %1300 = vmatprep.subr.bf16.mxu1 %v1417_v1 }
  0x39   : > { %1313 = vmatpush3.bf16.msra.mxu0 %v1388_v21 }
  0x3a   : > { %1314 = vmatprep.subr.bf16.mxu0 %v1417_v1 }
  0x3b   : > { %1301 = vmatpush3.bf16.msra.mxu1 %v1395_v28 }
  0x3c   : > { %1326 = vmatprep.subr.bf16.mxu1 %v1417_v1 }
  0x3d   : > { %1315 = vmatpush3.bf16.msra.mxu0 %v1390_v23 }
  0x3e   : > { %1316 = vmatprep.subr.bf16.mxu0 %v1417_v1 }
  0x41   : > { %1317 = vmatpush3.bf16.msra.mxu0 %v1392_v25 }
  0x42   : > { %1318 = vmatprep.subr.bf16.mxu0 %v1417_v1 }
  0x45   : > { %1319 = vmatpush3.bf16.msra.mxu0 %v1394_v27 }
  0x46   : > { %1320 = vmatprep.subr.bf16.mxu0 %v1417_v1 }
  0x49   : > { %1321 = vmatpush3.bf16.msra.mxu0 %v1396_v29 }
  0x4a   : > { %1346 = vmatprep.subr.bf16.mxu0 %v1417_v1 }
  0xdc   : > { %v341_v30 = vpop.f32.mrf.mxu0 }
  0xdd   : > { %v424_v31 = vpop.f32.mrf.mxu1  ;;  %v351_v38 = vrot.slane %v341_v30, 7 }
  0xde   : > { %v1260_v32 = vpop.f32.mrf.mxu0 }
  0xdf   : > { %v1272_v33 = vpop.f32.mrf.mxu1  ;;  %v356_v42 = vsel %vm350_vm2, 0.0, %v351_v38 }
  0xe0   : > { %v344_v34 = vpop.f32.mrf.mxu0  ;;  %v431_v47 = vadd.f32 %v424_v31, %v356_v42 }
  0xe1   : > { %v427_v35 = vpop.f32.mrf.mxu1  ;;  %v352_v39 = vrot.slane %v344_v34, 7 }
  0xe2   : > { %v1261_v36 = vpop.f32.mrf.mxu0 }
  0xe3   : > { %v1273_v37 = vpop.f32.mrf.mxu1  ;;  %v353_v43 = vsel %vm350_vm2, %v351_v38, %v352_v39 }
  0xe4   : > { %v432_v48 = vadd.f32 %v427_v35, %v353_v43  ;;  %v1184_v43 = vld [vmem:[%s1694_s4 + $0x4] ss:$0 sm:$0xff] }
  0xec   : > { %v500_v40 = vpop.f32.mrf.mxu0 }
  0xed   : > { %v510_v45 = vrot.slane %v500_v40, 1  ;;  %v1183_v40 = vld [vmem:[%s1694_s4 + $0x3] ss:$0 sm:$0xff] }
  0xee   : > { %v1284_v41 = vpop.f32.mrf.mxu0 }
  0xf0   : > { %v503_v44 = vpop.f32.mrf.mxu0 }
  0xf1   : > { %v511_v46 = vrot.slane %v503_v44, 1 }
  0xf2   : > { %v1285_v49 = vpop.f32.mrf.mxu0 }
  0xf3   : > { %v512_v50 = vsel %vm509_vm3, %v510_v45, %v511_v46  ;;  %v515_v51 = vsel %vm509_vm3, %v511_v46, 0.0 }
  0xf4   : > { %v516_v53 = vadd.f32 %v512_v50, %v431_v47  ;;  %v517_v54 = vadd.f32 %v515_v51, %v432_v48 }
  0xf6   : > { %v523_v55 = vadd.f32 %v1124_v52, %v516_v53  ;;  %v524_v56 = vadd.f32 %v1124_v52, %v517_v54 }
  0xf8   : > { %v525_v58 = vmax.f32 %v523_v55, 0.0  ;;  %v526_v59 = vmax.f32 %v524_v56, 0.0 }
  0xfa   : > { %v532_v61 = vmul.f32 %v1125_v57, %v525_v58  ;;  %v533_v62 = vmul.f32 %v1125_v57, %v526_v59 }
  0xfc   : > { %v539_v63 = vadd.f32 %v1126_v60, %v532_v61  ;;  %v540_v0 = vadd.f32 %v1126_v60, %v533_v62 }
  0xfe   : > { %v541_v4 = vpack.c.bf16 %v540_v0, %v539_v63 }
 0x100   : > { %1303 = vmatmul.mubr.bf16.vlgmr.msra.gmra.mxu1 %v541_v4  ;;  %1323 = vmatmul.mubr.bf16.vlgmr.msra.gmra.mxu0 %v541_v4 }
 0x101   : > { %1327 = vmatpush3.bf16.msra.mxu1 %v1397_v2  ;;  %1347 = vmatpush3.bf16.msra.mxu0 %v1402_v3 }
 0x102   : > { %1328 = vmatprep.subr.bf16.mxu1 %v1417_v1  ;;  %1348 = vmatprep.subr.bf16.mxu0 %v1417_v1 }
 0x103   : > { %1342 = vmatprep.mubr.msk.bf16.mxu1 %vm1418_vm0, %v1417_v1  ;;  %1354 = vmatprep.mubr.msk.bf16.mxu0 %vm1418_vm0, %v1417_v1 }
 0x105   : > { %1329 = vmatpush3.bf16.msra.mxu1 %v1398_v5  ;;  %1349 = vmatpush3.bf16.msra.mxu0 %v1404_v6 }
 0x106   : > { %1330 = vmatprep.subr.bf16.mxu1 %v1417_v1  ;;  %1350 = vmatprep.subr.bf16.mxu0 %v1417_v1 }
 0x109   : > { %1331 = vmatpush3.bf16.msra.mxu1 %v1399_v7  ;;  %1351 = vmatpush3.bf16.msra.mxu0 %v1406_v8 }
 0x10a   : > { %1332 = vmatprep.subr.bf16.mxu1 %v1417_v1  ;;  %1352 = vmatprep.subr.bf16.mxu0 %v1417_v1 }
 0x10d   : > { %1333 = vmatpush3.bf16.msra.mxu1 %v1400_v10  ;;  %1353 = vmatpush3.bf16.msra.mxu0 %v1408_v11 }
 0x10e   : > { %1334 = vmatprep.subr.bf16.mxu1 %v1417_v1 }
 0x110   : > { %1355 = vmatmul.mubr.msk.bf16.vlgmr.msra.gmra.mxu0 %vm303_vm1, %v1505_v9 }
 0x111   : > { %1335 = vmatpush3.bf16.msra.mxu1 %v1401_v12 }
 0x112   : > { %1336 = vmatprep.subr.bf16.mxu1 %v1417_v1 }
 0x115   : > { %1337 = vmatpush3.bf16.msra.mxu1 %v1403_v13 }
 0x116   : > { %1338 = vmatprep.subr.bf16.mxu1 %v1417_v1 }
 0x119   : > { %1339 = vmatpush3.bf16.msra.mxu1 %v1405_v14 }
 0x11a   : > { %1340 = vmatprep.subr.bf16.mxu1 %v1417_v1 }
 0x11d   : > { %1341 = vmatpush3.bf16.msra.mxu1 %v1407_v15 }
 0x120   : > { %1343 = vmatmul.mubr.bf16.vlgmr.msra.gmra.mxu1 %v541_v4 }
 0x1c0   : > { %v640_v9 = vpop.f32.mrf.mxu1  ;;  %v754_v16 = vpop.f32.mrf.mxu0 }
 0x1c1   : > { %v649_v27 = vrot.slane %v640_v9, 7 }
 0x1c2   : > { %v1304_v17 = vpop.f32.mrf.mxu1  ;;  %v1324_v18 = vpop.f32.mrf.mxu0 }
 0x1c3   : > { %v654_v1 = vsel %vm350_vm2, 0.0, %v649_v27 }
 0x1c4   : > { %v643_v19 = vpop.f32.mrf.mxu1  ;;  %v757_v20 = vpop.f32.mrf.mxu0  ;;  %v761_v35 = vadd.f32 %v754_v16, %v654_v1 }
 0x1c5   : > { %v650_v28 = vrot.slane %v643_v19, 7 }
 0x1c6   : > { %v1305_v21 = vpop.f32.mrf.mxu1  ;;  %v1325_v22 = vpop.f32.mrf.mxu0 }
 0x1c7   : > { %v651_v31 = vsel %vm350_vm2, %v649_v27, %v650_v28 }
 0x1c8   : > { %v762_v36 = vadd.f32 %v757_v20, %v651_v31 }
 0x1d0   : > { %v959_v23 = vpop.f32.mrf.mxu0 }
 0x1d1   : > { %v960_v46 = vadd.f32 %v1184_v43, %v959_v23 }
 0x1d2   : > { %v1356_v24 = vpop.f32.mrf.mxu0 }
 0x1d4   : > { %v962_v25 = vpop.f32.mrf.mxu0 }
 0x1d5   : > { %v963_v49 = vadd.f32 %v1184_v43, %v962_v25 }
 0x1d6   : > { %v1357_v26 = vpop.f32.mrf.mxu0 }
 0x1e0   : > { %v862_v29 = vpop.f32.mrf.mxu1 }
 0x1e1   : > { %v871_v33 = vrot.slane %v862_v29, 1 }
 0x1e2   : > { %v1344_v30 = vpop.f32.mrf.mxu1 }
 0x1e4   : > { %v865_v32 = vpop.f32.mrf.mxu1 }
 0x1e5   : > { %v872_v34 = vrot.slane %v865_v32, 1 }
 0x1e6   : > { %v1345_v37 = vpop.f32.mrf.mxu1 }
 0x1e7   : > { %v873_v38 = vsel %vm509_vm3, %v871_v33, %v872_v34  ;;  %v876_v39 = vsel %vm509_vm3, %v872_v34, 0.0 }
 0x1e8   : > { %v877_v41 = vadd.f32 %v873_v38, %v761_v35  ;;  %v878_v42 = vadd.f32 %v876_v39, %v762_v36 }
 0x1ea   : > { %v884_v44 = vadd.f32 %v1183_v40, %v877_v41  ;;  %v885_v45 = vadd.f32 %v1183_v40, %v878_v42 }
 0x1ec   : > { %v886_v47 = vmax.f32 %v884_v44, 0.0  ;;  %v887_v48 = vmax.f32 %v885_v45, 0.0 }
 0x1ee   : > { %v966_v50 = vadd.f32 %v960_v46, %v886_v47  ;;  %v967_v51 = vadd.f32 %v963_v49, %v887_v48 }
 0x1f0   : > { %v1201_v52 = vpack.c.bf16 %v967_v51, %v966_v50  ;;  %v978_v53 = vadd.f32 %v967_v51, %v966_v50  ;;  %v985_v54 = vmul.f32 %v966_v50, %v966_v50  ;;  %v986_v55 = vmul.f32 %v967_v51, %v967_v51 }
 0x1f2   : > { %1202 = vst [vmem:[%s258_s11] sm:$0xff] %v1201_v52   ;;  %v979_v56 = vrot.slane %v978_v53, 4  ;;  %v987_v57 = vadd.f32 %v986_v55, %v985_v54 }
 0x1f4   : > { %v980_v58 = vadd.f32 %v979_v56, %v978_v53  ;;  %v988_v59 = vrot.slane %v987_v57, 4 }
 0x1f6   : > { %v981_v60 = vrot.slane %v980_v58, 2  ;;  %v989_v61 = vadd.f32 %v988_v59, %v987_v57 }
 0x1f8   : > { %v982_v62 = vadd.f32 %v981_v60, %v980_v58  ;;  %v990_v63 = vrot.slane %v989_v61, 2 }
 0x1fa   : > { %v983_v0 = vrot.slane %v982_v62, 1  ;;  %v991_v2 = vadd.f32 %v990_v63, %v989_v61 }
 0x1fc   : > { %v992_v3 = vrot.slane %v991_v2, 1  ;;  %v984_v4 = vadd.f32 %v983_v0, %v982_v62 }
 0x1fe   : > { %v993_v5 = vadd.f32 %v992_v3, %v991_v2 }
 0x200   : > { %v994_v6 = vsel %vm350_vm2, %v984_v4, %v993_v5 }
 0x201   : > { %995 = vst [vmem:[%s262_s14] sm:$0x3] %v994_v6 }
 0x202 PF: > { %s17_s21 = sadd.s32 1, %s1415_s21  }
 0x203   : > { %p14_p4 = scmp.ge.s32.totalorder %s17_s21, 4  }
 0x205   :  { %16 = sbr.rel (!%p14_p4) target bundleno = 1 (0x1), region = 86 }

// kernel: residual_layer_forward.5
= control target key start
LH: loop header
LB: loop body
LE: loop exit
PB: predicated region body
PF: predicated region fallthrough
CT: control target
= control target key end

     0   :  { %s269_s9 = smov 0   ;;  %s286_s0 = inlined_call_operand.vmem [shape: bf16[2,16,128], index: 0, kind: input, shape index: {}]   ;;  %s287_s1 = inlined_call_operand.vmem [shape: f32[2,128], index: 1, kind: input, shape index: {}]   ;;  %s288_s2 = inlined_call_operand.vmem [shape: f32[2,16,128], index: 2, kind: output, shape index: {}]  }
   0x1 LB: > { %s219_s10 = sadd.s32 4294967295, %s252_s9   ;;  %p223_p0 = scmp.ge.s32.totalorder %s252_s9, 1  ;;  %s252_s9 = sphi %s269_s9, %s12_s9  }
   0x2   : > { %p112_p1 = scmp.lt.s32.totalorder %s252_s9, 3 }
   0x4   : > { %p113_p2 = pnand %p223_p0, %p112_p1 }
   0x5   : > { %p134_p3 = scmp.lt.s32.totalorder (!%p113_p2), %s219_s10, 1 }
   0x6   : > { %116 = sbr.rel (%p113_p2) target bundleno = 22 (0x16), region = 28 }
   0xb   : > { %s290_s10 = smov (!%p134_p3, %s219_s10), 1  ;;  %v228_v1 = vld [vmem:[%s287_s1] ss:$0 sm:$0xff]  ;;  %v229_v4 = vld [vmem:[%s287_s1 + $0x1] ss:$0 sm:$0xff] }
   0xc   : > { %s232_s11 = sshll.u32 %s290_s10, 3  ;;  %s233_s17 = sshll.u32 %s290_s10, 4 }
   0xd   : > { %s138_s14 = scalar_lea.vmem %s286_s0, %s232_s11  ;;  %s143_s22 = scalar_lea.vmem %s288_s2, %s233_s17 }
   0xe   : > { %v235_v0 = vld [vmem:[%s138_s14] sm:$0xff]  }
   0xf   : > { %v236_v2 = vunpack.c.l.bf16 %v235_v0  ;;  %v237_v3 = vunpack.c.h.bf16 %v235_v0 }
  0x11   : > { %v153_v5 = vmul.f32 %v236_v2, %v228_v1  ;;  %v154_v6 = vmul.f32 %v237_v3, %v228_v1 }
  0x13   : > { %v160_v7 = vadd.f32 %v229_v4, %v153_v5  ;;  %v161_v8 = vadd.f32 %v229_v4, %v154_v6 }
  0x15   : > { %162 = vst [vmem:[%s143_s22] sm:$0xff] %v160_v7  ;;  %163 = vst [vmem:[%s143_s22 + $0x8] sm:$0xff] %v161_v8 }
  0x16 PF: > { %s12_s9 = sadd.s32 1, %s252_s9  }
  0x17   : > { %p9_p4 = scmp.ge.s32.totalorder %s12_s9, 4  }
  0x19   :  { %11 = sbr.rel (!%p9_p4) target bundleno = 1 (0x1), region = 58 }

</bundles_post_ra>
